<compile_context>
chip_gen: v7x
topology: tpu7x:2x2x1
jax: 0.10.0
libtpu: 0.0.40
codegen_flags: <defaults>
</compile_context>

<pallas_src>
import functools

import jax
import jax.numpy as jnp
from jax.experimental import pallas as pl
from jax.experimental.pallas import tpu as pltpu


def focal_loss_kernel(logits_ref, labels_ref, out_ref, *, alpha, gamma, num_rows):
    logits = logits_ref[...].astype(jnp.float32)          # (TB, C)
    labels = labels_ref[...]                               # (TB, 1) int32
    tb, c = logits.shape

    # Numerically-stable softmax pieces (same math as torch cross_entropy).
    m = jnp.max(logits, axis=-1, keepdims=True)             # (TB, 1)
    shifted = logits - m
    exps = jnp.exp(shifted)                                  # (TB, C) single EUP pass
    sum_exp = jnp.sum(exps, axis=-1, keepdims=True)          # (TB, 1)

    # One-hot of the true class built from a 2-D iota (no data-dependent gather).
    class_idx = jax.lax.broadcasted_iota(jnp.int32, (tb, c), 1)
    onehot = (class_idx == labels).astype(jnp.float32)       # (TB, C)
    true_shifted = jnp.sum(shifted * onehot, axis=-1, keepdims=True)  # (TB, 1)
    true_exp = jnp.sum(exps * onehot, axis=-1, keepdims=True)         # (TB, 1)

    ce = jnp.log(sum_exp) - true_shifted                     # per-sample CE
    # pt = softmax prob of the true class == exp(-ce); reuses `exps`, exact recip.
    pt = true_exp * pl.reciprocal(sum_exp)

    # (1 - pt)**gamma without a float-exponent pow (NaN-safe, VPU-only for int gamma).
    omp = jnp.maximum(1.0 - pt, 0.0)
    g = float(gamma)
    if g == int(g) and 0 <= int(g) <= 8:
        w = jnp.ones_like(omp)
        for _ in range(int(g)):
            w = w * omp
    else:
        w = omp ** g

    loss = alpha * w * ce                                    # (TB, 1)

    # Mask padded rows of the last (partial) tile.
    row = jax.lax.broadcasted_iota(jnp.int32, (tb, 1), 0) + pl.program_id(0) * tb
    out_ref[...] = jnp.where(row < num_rows, loss, 0.0)


def _choose_tile_rows(B, C, itemsize):
    """Largest multiple-of-8 batch tile whose double-buffered logits fit ~8 MiB."""
    budget = 8 * 1024 * 1024
    max_rows = max(8, budget // max(1, 2 * C * itemsize))
    tb = min(1024, max_rows)
    tb = max(8, (tb // 8) * 8)
    if tb >= B:
        return B          # single full-extent tile (always a legal block shape)
    return tb


def focal_loss(y_probs, y_true, alpha=4.0, gamma=2.0, tile_rows=None):
    """y_probs: float logits [B, C] (f32 or bf16); y_true: int labels [B]. Returns scalar f32."""
    B, C = y_probs.shape
    labels2d = y_true.astype(jnp.int32).reshape(B, 1)

    itemsize = jnp.dtype(y_probs.dtype).itemsize
    tb = tile_rows if tile_rows is not None else _choose_tile_rows(B, C, itemsize)
    num_tiles = pl.cdiv(B, tb)
    padded_b = num_tiles * tb

    kernel = functools.partial(
        focal_loss_kernel, alpha=float(alpha), gamma=float(gamma), num_rows=B)

    per_row = pl.pallas_call(
        kernel,
        out_shape=jax.ShapeDtypeStruct((padded_b, 1), jnp.float32),
        grid_spec=pltpu.PrefetchScalarGridSpec(
            num_scalar_prefetch=0,
            grid=(num_tiles,),
            in_specs=[
                pl.BlockSpec((tb, C), lambda i: (i, 0)),
                pl.BlockSpec((tb, 1), lambda i: (i, 0)),
            ],
            out_specs=pl.BlockSpec((tb, 1), lambda i: (i, 0)),
        ),
        compiler_params=pltpu.CompilerParams(
            dimension_semantics=("parallel",)),
    )(y_probs, labels2d)

    # Padded rows were zeroed in-kernel; divide by the true batch size exactly once.
    return jnp.sum(per_row) / B


def focal_loss_ref(y_probs, y_true, alpha=4.0, gamma=2.0):
    """Pure-JAX reference mirroring torch.nn.functional.cross_entropy semantics."""
    logits = y_probs.astype(jnp.float32)
    lse = jax.nn.logsumexp(logits, axis=-1)
    true_logit = jnp.take_along_axis(
        logits, y_true[:, None].astype(jnp.int32), axis=-1)[:, 0]
    ce = lse - true_logit
    pt = jnp.exp(-ce)
    return jnp.mean(alpha * (1.0 - pt) ** gamma * ce)


if __name__ == "__main__":
    key = jax.random.PRNGKey(0)
    k1, k2, k3, k4 = jax.random.split(key, 4)

    # Small shapes consistent with batch_size x n_class.
    B, C = 8, 16
    y_probs = jax.random.normal(k1, (B, C), dtype=jnp.float32)
    y_true = jax.random.randint(k2, (B,), 0, C, dtype=jnp.int32)

    loss = focal_loss(y_probs, y_true, alpha=4.0, gamma=2.0)
    loss = jax.block_until_ready(loss)
    ref = focal_loss_ref(y_probs, y_true, alpha=4.0, gamma=2.0)
    assert jnp.allclose(loss, ref, rtol=1e-5, atol=1e-5), (loss, ref)

    # Exercise the multi-tile + ragged-last-tile masking path with a tiny forced tile.
    B2, C2 = 20, 16
    y_probs2 = jax.random.normal(k3, (B2, C2), dtype=jnp.float32)
    y_true2 = jax.random.randint(k4, (B2,), 0, C2, dtype=jnp.int32)
    loss2 = focal_loss(y_probs2, y_true2, alpha=4.0, gamma=2.0, tile_rows=8)
    loss2 = jax.block_until_ready(loss2)
    ref2 = focal_loss_ref(y_probs2, y_true2, alpha=4.0, gamma=2.0)
    assert jnp.allclose(loss2, ref2, rtol=1e-5, atol=1e-5), (loss2, ref2)

    print("KERNEL_OK")
</pallas_src>

<mosaic_0001>
module attributes {stable_mosaic.version = 11 : i64} {
  func.func @focal_loss_kernel(%arg0: i32, %arg1: memref<8x16xf32, #tpu.memory_space<vmem>>, %arg2: memref<8x1xi32, #tpu.memory_space<vmem>>, %arg3: memref<8x1xf32, #tpu.memory_space<vmem>>) attributes {dimension_semantics = [#tpu.dimension_semantics<parallel>], iteration_bounds = array<i64: 1>, scalar_prefetch = 0 : i64, scratch_operands = 0 : i64, tpu.core_type = #tpu.core_type<tc>, window_params = [{transform_indices = @transform_0, window_bounds = array<i64: 8, 16>}, {transform_indices = @transform_1, window_bounds = array<i64: 8, 1>}, {transform_indices = @transform_2, window_bounds = array<i64: 8, 1>}]} {
    %c0 = arith.constant 0 : index
    %c0_0 = arith.constant 0 : index
    %0 = vector.load %arg1[%c0, %c0_0] : memref<8x16xf32, #tpu.memory_space<vmem>>, vector<8x16xf32>
    %c0_1 = arith.constant 0 : index
    %c0_2 = arith.constant 0 : index
    %1 = vector.load %arg2[%c0_1, %c0_2] : memref<8x1xi32, #tpu.memory_space<vmem>>, vector<8x1xi32>
    %cst = arith.constant dense<0xFF800000> : vector<8xf32>
    %2 = vector.multi_reduction <maximumf>, %0, %cst [1] : vector<8x16xf32> to vector<8xf32>
    %3 = vector.shape_cast %2 : vector<8xf32> to vector<8x1xf32>
    %4 = vector.broadcast %3 : vector<8x1xf32> to vector<8x16xf32>
    %5 = arith.subf %0, %4 : vector<8x16xf32>
    %6 = math.exp %5 : vector<8x16xf32>
    %cst_3 = arith.constant dense<0.000000e+00> : vector<8xf32>
    %7 = vector.multi_reduction <add>, %6, %cst_3 [1] : vector<8x16xf32> to vector<8xf32>
    %8 = vector.shape_cast %7 : vector<8xf32> to vector<8x1xf32>
    %9 = tpu.iota {dimensions = array<i32: 1>} : vector<8x16xi32>
    %10 = vector.broadcast %1 : vector<8x1xi32> to vector<8x16xi32>
    %11 = arith.cmpi eq, %9, %10 : vector<8x16xi32>
    %12 = arith.extui %11 : vector<8x16xi1> to vector<8x16xi32>
    %13 = arith.sitofp %12 : vector<8x16xi32> to vector<8x16xf32>
    %14 = arith.mulf %5, %13 : vector<8x16xf32>
    %cst_4 = arith.constant dense<0.000000e+00> : vector<8xf32>
    %15 = vector.multi_reduction <add>, %14, %cst_4 [1] : vector<8x16xf32> to vector<8xf32>
    %16 = vector.shape_cast %15 : vector<8xf32> to vector<8x1xf32>
    %17 = arith.mulf %6, %13 : vector<8x16xf32>
    %cst_5 = arith.constant dense<0.000000e+00> : vector<8xf32>
    %18 = vector.multi_reduction <add>, %17, %cst_5 [1] : vector<8x16xf32> to vector<8xf32>
    %19 = vector.shape_cast %18 : vector<8xf32> to vector<8x1xf32>
    %20 = math.log %8 : vector<8x1xf32>
    %21 = arith.subf %20, %16 : vector<8x1xf32>
    %22 = tpu.reciprocal %8 : vector<8x1xf32> -> vector<8x1xf32>
    %23 = arith.mulf %19, %22 : vector<8x1xf32>
    %cst_6 = arith.constant 1.000000e+00 : f32
    %24 = vector.broadcast %cst_6 : f32 to vector<8x1xf32>
    %25 = arith.subf %24, %23 : vector<8x1xf32>
    %cst_7 = arith.constant 0.000000e+00 : f32
    %26 = vector.broadcast %cst_7 : f32 to vector<8x1xf32>
    %27 = arith.maximumf %25, %26 : vector<8x1xf32>
    %cst_8 = arith.constant 1.000000e+00 : f32
    %28 = vector.broadcast %cst_8 : f32 to vector<8x1xf32>
    %29 = arith.mulf %28, %27 : vector<8x1xf32>
    %30 = arith.mulf %29, %27 : vector<8x1xf32>
    %cst_9 = arith.constant 4.000000e+00 : f32
    %31 = vector.broadcast %cst_9 : f32 to vector<8x1xf32>
    %32 = arith.mulf %31, %30 : vector<8x1xf32>
    %33 = arith.mulf %32, %21 : vector<8x1xf32>
    %34 = tpu.iota {dimensions = array<i32: 0>} : vector<8x1xi32>
    %c8_i32 = arith.constant 8 : i32
    %35 = arith.muli %arg0, %c8_i32 : i32
    %36 = vector.broadcast %35 : i32 to vector<8x1xi32>
    %37 = arith.addi %34, %36 : vector<8x1xi32>
    %c8_i32_10 = arith.constant 8 : i32
    %38 = vector.broadcast %c8_i32_10 : i32 to vector<8x1xi32>
    %39 = arith.cmpi slt, %37, %38 : vector<8x1xi32>
    %cst_11 = arith.constant 0.000000e+00 : f32
    %40 = vector.broadcast %cst_11 : f32 to vector<8x1xf32>
    %41 = arith.select %39, %33, %40 : vector<8x1xi1>, vector<8x1xf32>
    %c0_12 = arith.constant 0 : index
    %c0_13 = arith.constant 0 : index
    %42 = vector.load %arg3[%c0_12, %c0_13] : memref<8x1xf32, #tpu.memory_space<vmem>>, vector<8x1xf32>
    tpu.vector_store %arg3[%c0_12, %c0_13], %41 {strides = array<i32>} : memref<8x1xf32, #tpu.memory_space<vmem>>, vector<8x1xf32>,
    return
  }
  func.func @transform_0(%arg0: i32) -> (i32, i32) {
    %c0_i32 = arith.constant 0 : i32
    %c0_i32_0 = arith.constant 0 : i32
    return %arg0, %c0_i32 : i32, i32
  }
  func.func @transform_1(%arg0: i32) -> (i32, i32) {
    %c0_i32 = arith.constant 0 : i32
    %c0_i32_0 = arith.constant 0 : i32
    return %arg0, %c0_i32 : i32, i32
  }
  func.func @transform_2(%arg0: i32) -> (i32, i32) {
    %c0_i32 = arith.constant 0 : i32
    %c0_i32_0 = arith.constant 0 : i32
    return %arg0, %c0_i32 : i32, i32
  }
}

</mosaic_0001>

<bundles_post_ra>
// kernel: tpu_custom_call.1
= control target key start
LH: loop header
LB: loop body
LE: loop exit
PB: predicated region body
PF: predicated region fallthrough
CT: control target
= control target key end

     0   :  { %vm13_vm0 = vcmask 130048   ;;  %v72_v1 = vmov 0   ;;  %v23_v7 = vlaneseq  ;;  %v73_v11 = vmov 0.0   ;;  %s102_s0 = inlined_call_operand.vmem [shape: f32[8,16], index: 0, kind: input, shape index: {}]   ;;  %s103_s1 = inlined_call_operand.vmem [shape: s32[8,1], index: 1, kind: input, shape index: {}]   ;;  %s104_s2 = inlined_call_operand.vmem [shape: f32[8,1], index: 2, kind: output, shape index: {}]  }
   0x1   :  { %v11_v0 = vld [vmem:[%s102_s0] sm:$0xff]  ;;  %65 = vset.pattern.permute.xlu0 %v72_v1  ;;  %vm56_vm2 = vcmask 7168  }
   0x2   :  { %v14_v2 = vsel %vm13_vm0, %v11_v0, -inf  ;;  %v12_v3 = vld [vmem:[%s103_s1] sm:$0xff]  ;;  %v24_v8 = vand.u32 127, %v23_v7 }
   0x3   :  { %15 = vmax.xlane.f32.xlu0 %v14_v2 }
  0x19   :  { %26 = vperm.xlu0 %65, %v12_v3  }
  0x90   :  { %v16_v4 = vpop.xlane.xlu0 %15 }
  0x91   :  { %v17_v5 = vsub.f32 %v11_v0, %v16_v4 }
  0x93   :  { %v18_v6 = vmul.f32 1.442695, %v17_v5 }
  0x95   :  { %66 = vpow2.f32 %v18_v6 }
  0x98   :  { %v27_v9 = vpop.permute.xlu0 %26 }
  0x99   :  { %vm28_vm1 = vcmp.eq.s32.totalorder %v24_v8, %v27_v9 }
  0x9a   :  { %v62_v12 = vsel %vm28_vm1, 1.0, %v73_v11 }
  0x9b   :  { %v31_v16 = vmul.f32 %v62_v12, %v17_v5 }
  0x9d   :  { %v32_v17 = vsel %vm13_vm0, %v31_v16, 0.0 }
  0x9f   :  { %v67_v10 = vpop.eup %66 }
  0xa0   :  { %v20_v13 = vsel %vm13_vm0, %v67_v10, 0.0  ;;  %v35_v14 = vmul.f32 %v67_v10, %v62_v12 }
  0xa1   :  { %21 = vadd.xlane.f32.xlu1 %v20_v13 }
  0xa2   :  { %v36_v15 = vsel %vm13_vm0, %v35_v14, 0.0 }
  0xa5   :  { %37 = vadd.xlane.f32.xlu1 %v36_v15 }
  0xa9   :  { %33 = vadd.xlane.f32.xlu1 %v32_v17 }
 0x12e   :  { %v22_v18 = vpop.xlane.xlu1 %21 }
 0x12f   :  { %68 = vrcp.f32 %v22_v18 }
 0x130   :  { %70 = vlog2.f32 %v22_v18 }
 0x132   :  { %v38_v20 = vpop.xlane.xlu1 %37 }
 0x136   :  { %v34_v27 = vpop.xlane.xlu1 %33 }
 0x139   :  { %v69_v19 = vpop.eup %68 }
 0x13a   :  { %v43_v21 = vmul.f32 %v69_v19, %v38_v20  ;;  %v71_v22 = vpop.eup %70 }
 0x13b   :  { %v40_v25 = vmul.f32 0.6931472, %v71_v22 }
 0x13c   :  { %v44_v23 = vsub.f32 1.0, %v43_v21 }
 0x13d   :  { %v41_v29 = vsub.f32 %v40_v25, %v34_v27 }
 0x13e   :  { %v45_v24 = vmax.f32 %v44_v23, 0.0 }
 0x140   :  { %v46_v26 = vmul.f32 %v45_v24, %v45_v24 }
 0x142   :  { %v47_v28 = vmul.f32 4.0, %v46_v26 }
 0x144   :  { %v48_v30 = vmul.f32 %v47_v28, %v41_v29 }
 0x146   :  { %57 = vst.msk [vmem:[%s104_s2] sm:$0xff] %vm56_vm2, %v48_v30 }

</bundles_post_ra>
